<compile_context>
chip_gen: v7x
topology: tpu7x:2x2x1
jax: 0.10.0
libtpu: 0.0.40
codegen_flags: <defaults>
</compile_context>

<pallas_src>
import jax
import jax.numpy as jnp
from jax.experimental import pallas as pl
from jax.experimental.pallas import tpu as pltpu


def _make_kernel(K, C_in, KC, KC_pad, TL, NT, dilation, cdt):
    def kernel(x_ref, w_ref, o_ref, t_ref):
        # x_ref: (C_in, N_halo)   halo'd input row for this batch element
        # w_ref: (C_out, KC_pad)  weights (k-major, ci-minor) + bias col + zero pad
        # o_ref: (C_out, TL)      output tile (final layout, batch dim squeezed)
        # t_ref: (KC_pad, TL)     VMEM scratch: in-kernel im2col taps
        if NT == 1:
            base = 0
        else:
            base = pl.multiple_of(pl.program_id(1) * TL, TL)

        # Build the K taps from the halo'd slab (static unroll over K).
        for k in range(K):
            t_ref[pl.ds(k * C_in, C_in), :] = x_ref[:, pl.ds(base + k * dilation, TL)]

        # Bias row (ones) + zero padding rows.  Rewritten every grid step so the
        # kernel stays correct no matter how the parallel axes are sharded
        # across TensorCores (each core has its own scratch).
        t_ref[pl.ds(KC, 1), :] = jnp.ones((1, TL), dtype=cdt)
        if KC_pad > KC + 1:
            t_ref[pl.ds(KC + 1, KC_pad - KC - 1), :] = jnp.zeros(
                (KC_pad - KC - 1, TL), dtype=cdt)

        # One fused MXU matmul (taps + bias), f32 accumulation; pure cast+store.
        acc = jnp.dot(w_ref[...], t_ref[...], preferred_element_type=jnp.float32)
        o_ref[...] = acc.astype(o_ref.dtype)

    return kernel


def dilated_circ_conv(x, weight, bias, *, n_adj=4, dilation=1,
                      compute_dtype=None, max_lane_tile=8192):
    """Circular-padded dilated Conv1d (DilatedCircConv.forward; `adj` is unused).

    x: (B, C_in, N); weight: (C_out, C_in, K); bias: (C_out,) -> (B, C_out, N).
    """
    B, C_in, N = x.shape
    C_out, C_in_w, K = weight.shape
    assert C_in_w == C_in and K == 2 * n_adj + 1
    assert max_lane_tile % 128 == 0

    cdt = x.dtype if compute_dtype is None else jnp.dtype(compute_dtype)
    out_dtype = x.dtype
    pad = n_adj * dilation

    # ---- lane tiling of N (output positions live on lanes, per batch) ------
    if N <= max_lane_tile:
        TL, NT, N_pad = N, 1, N            # full-extent block: no pad, no post-slice
    else:
        TL = max_lane_tile                 # multiple of 128
        N_pad = pl.cdiv(N, TL) * TL
        NT = N_pad // TL
    N_halo = N_pad + 2 * pad

    # ---- circular halo (only 2*pad extra columns; wraps correctly even for
    #      pad > N) instead of a K-times inflated im2col in HBM ---------------
    halo_idx = jnp.arange(-pad, N + pad) % N                  # (N + 2*pad,)
    x_halo = x[:, :, halo_idx]                                # (B, C_in, N + 2*pad)
    if N_pad > N:
        x_halo = jnp.pad(x_halo, ((0, 0), (0, 0), (0, N_pad - N)))
    x_halo = x_halo.astype(cdt)

    # ---- weights: (C_out, K*C_in) (k-major, ci-minor) + bias col + zero pad -
    KC = K * C_in
    KC_pad = ((KC + 1 + 7) // 8) * 8       # bias row folded in, rounded up to 8
    w2 = jnp.transpose(weight, (0, 2, 1)).reshape(C_out, KC)
    w2 = jnp.concatenate(
        [w2, bias.reshape(C_out, 1),
         jnp.zeros((C_out, KC_pad - KC - 1), weight.dtype)], axis=1).astype(cdt)

    # TODO(synk): for very large C_in * N (several MiB per batch row) the x block
    # would need a halo'd lane-tiled BlockSpec instead of a full-N-resident row to
    # stay inside v7x's 32 MiB scoped VMEM.

    kernel = _make_kernel(K, C_in, KC, KC_pad, TL, NT, dilation, cdt)
    y = pl.pallas_call(
        kernel,
        out_shape=jax.ShapeDtypeStruct((B, C_out, N_pad), out_dtype),
        grid_spec=pltpu.PrefetchScalarGridSpec(
            num_scalar_prefetch=0,
            grid=(B, NT),
            in_specs=[
                pl.BlockSpec((None, C_in, N_halo), lambda b, j: (b, 0, 0)),
                pl.BlockSpec((C_out, KC_pad), lambda b, j: (0, 0)),
            ],
            out_specs=pl.BlockSpec((None, C_out, TL), lambda b, j: (b, 0, j)),
            scratch_shapes=[pltpu.VMEM((KC_pad, TL), cdt)],
        ),
        compiler_params=pltpu.CompilerParams(
            dimension_semantics=("parallel", "parallel"),
        ),
    )(x_halo, w2)

    if N_pad > N:
        y = y[:, :, :N]
    return y


def reference(x, weight, bias, *, n_adj=4, dilation=1):
    """Plain-JAX reference with identical (circular Conv1d) semantics."""
    B, C_in, N = x.shape
    C_out, _, K = weight.shape
    offs = (jnp.arange(K) - n_adj) * dilation
    idx = (jnp.arange(N)[None, :] + offs[:, None]) % N          # (K, N)
    out = jnp.broadcast_to(bias.reshape(1, C_out, 1), (B, C_out, N)).astype(jnp.float32)
    for k in range(K):
        xk = x[:, :, idx[k]]                                    # (B, C_in, N)
        out = out + jnp.einsum("oc,bcn->bon", weight[:, :, k], xk)
    return out.astype(x.dtype)


if __name__ == "__main__":
    # Module config: state_dim=4, out_state_dim=4, n_adj=4, dilation=1 -> K=9
    state_dim = 4
    out_state_dim = 4
    n_adj = 4
    dilation = 1
    K = 2 * n_adj + 1

    B, N = 2, 16  # batch, number of points on the contour

    key = jax.random.PRNGKey(0)
    kx, kw, kb = jax.random.split(key, 3)

    # Deterministic synthetic params (Conv1d-style fan-in scaling).
    fan_in = state_dim * K
    bound = 1.0 / (fan_in ** 0.5)
    weight = jax.random.uniform(kw, (out_state_dim, state_dim, K),
                                minval=-bound, maxval=bound, dtype=jnp.float32)
    bias = jax.random.uniform(kb, (out_state_dim,),
                              minval=-bound, maxval=bound, dtype=jnp.float32)

    x = jax.random.normal(kx, (B, state_dim, N), dtype=jnp.float32)
    adj = None  # forward() ignores `adj`

    # f32 path (exact semantics of the original module)
    y = dilated_circ_conv(x, weight, bias, n_adj=n_adj, dilation=dilation)
    y = jax.block_until_ready(y)

    y_ref = reference(x, weight, bias, n_adj=n_adj, dilation=dilation)
    assert y.shape == (B, out_state_dim, N)
    assert jnp.allclose(y, y_ref, atol=1e-5, rtol=1e-5)

    # bf16 compute path (halves HBM traffic; f32 accumulation, f32 output)
    y_bf16 = dilated_circ_conv(x, weight, bias, n_adj=n_adj, dilation=dilation,
                               compute_dtype=jnp.bfloat16)
    y_bf16 = jax.block_until_ready(y_bf16)
    assert jnp.allclose(y_bf16, y_ref, atol=5e-2, rtol=5e-2)

    print("KERNEL_OK")
</pallas_src>

<mosaic_0001>
module attributes {stable_mosaic.version = 11 : i64} {
  func.func @kernel(%arg0: i32, %arg1: i32, %arg2: memref<1x4x24xf32, #tpu.memory_space<vmem>>, %arg3: memref<4x40xf32, #tpu.memory_space<vmem>>, %arg4: memref<1x4x16xf32, #tpu.memory_space<vmem>>, %arg5: memref<40x16xf32, #tpu.memory_space<vmem>>) attributes {dimension_semantics = [#tpu.dimension_semantics<parallel>, #tpu.dimension_semantics<parallel>], iteration_bounds = array<i64: 2, 1>, scalar_prefetch = 0 : i64, scratch_operands = 1 : i64, tpu.core_type = #tpu.core_type<tc>, window_params = [{transform_indices = @transform_0, window_bounds = array<i64: 1, 4, 24>}, {pipeline_mode = #tpu.pipeline_mode<synchronous>, transform_indices = @transform_1, window_bounds = array<i64: 4, 40>}, {transform_indices = @transform_2, window_bounds = array<i64: 1, 4, 16>}]} {
    %c0 = arith.constant 0 : index
    %c0_0 = arith.constant 0 : index
    %c0_1 = arith.constant 0 : index
    %0 = vector.load %arg2[%c0, %c0_0, %c0_1] : memref<1x4x24xf32, #tpu.memory_space<vmem>>, vector<1x4x16xf32>
    %1 = vector.shape_cast %0 : vector<1x4x16xf32> to vector<4x16xf32>
    %c0_2 = arith.constant 0 : index
    %c0_3 = arith.constant 0 : index
    %2 = vector.load %arg5[%c0_2, %c0_3] : memref<40x16xf32, #tpu.memory_space<vmem>>, vector<4x16xf32>
    tpu.vector_store %arg5[%c0_2, %c0_3], %1 {strides = array<i32>} : memref<40x16xf32, #tpu.memory_space<vmem>>, vector<4x16xf32>,
    %c0_4 = arith.constant 0 : index
    %c0_5 = arith.constant 0 : index
    %c1 = arith.constant 1 : index
    %3 = vector.load %arg2[%c0_4, %c0_5, %c1] : memref<1x4x24xf32, #tpu.memory_space<vmem>>, vector<1x4x16xf32>
    %4 = vector.shape_cast %3 : vector<1x4x16xf32> to vector<4x16xf32>
    %c4 = arith.constant 4 : index
    %c0_6 = arith.constant 0 : index
    %5 = vector.load %arg5[%c4, %c0_6] : memref<40x16xf32, #tpu.memory_space<vmem>>, vector<4x16xf32>
    tpu.vector_store %arg5[%c4, %c0_6], %4 {strides = array<i32>} : memref<40x16xf32, #tpu.memory_space<vmem>>, vector<4x16xf32>,
    %c0_7 = arith.constant 0 : index
    %c0_8 = arith.constant 0 : index
    %c2 = arith.constant 2 : index
    %6 = vector.load %arg2[%c0_7, %c0_8, %c2] : memref<1x4x24xf32, #tpu.memory_space<vmem>>, vector<1x4x16xf32>
    %7 = vector.shape_cast %6 : vector<1x4x16xf32> to vector<4x16xf32>
    %c8 = arith.constant 8 : index
    %c0_9 = arith.constant 0 : index
    %8 = vector.load %arg5[%c8, %c0_9] : memref<40x16xf32, #tpu.memory_space<vmem>>, vector<4x16xf32>
    tpu.vector_store %arg5[%c8, %c0_9], %7 {strides = array<i32>} : memref<40x16xf32, #tpu.memory_space<vmem>>, vector<4x16xf32>,
    %c0_10 = arith.constant 0 : index
    %c0_11 = arith.constant 0 : index
    %c3 = arith.constant 3 : index
    %9 = vector.load %arg2[%c0_10, %c0_11, %c3] : memref<1x4x24xf32, #tpu.memory_space<vmem>>, vector<1x4x16xf32>
    %10 = vector.shape_cast %9 : vector<1x4x16xf32> to vector<4x16xf32>
    %c12 = arith.constant 12 : index
    %c0_12 = arith.constant 0 : index
    %11 = vector.load %arg5[%c12, %c0_12] : memref<40x16xf32, #tpu.memory_space<vmem>>, vector<4x16xf32>
    tpu.vector_store %arg5[%c12, %c0_12], %10 {strides = array<i32>} : memref<40x16xf32, #tpu.memory_space<vmem>>, vector<4x16xf32>,
    %c0_13 = arith.constant 0 : index
    %c0_14 = arith.constant 0 : index
    %c4_15 = arith.constant 4 : index
    %12 = vector.load %arg2[%c0_13, %c0_14, %c4_15] : memref<1x4x24xf32, #tpu.memory_space<vmem>>, vector<1x4x16xf32>
    %13 = vector.shape_cast %12 : vector<1x4x16xf32> to vector<4x16xf32>
    %c16 = arith.constant 16 : index
    %c0_16 = arith.constant 0 : index
    %14 = vector.load %arg5[%c16, %c0_16] : memref<40x16xf32, #tpu.memory_space<vmem>>, vector<4x16xf32>
    tpu.vector_store %arg5[%c16, %c0_16], %13 {strides = array<i32>} : memref<40x16xf32, #tpu.memory_space<vmem>>, vector<4x16xf32>,
    %c0_17 = arith.constant 0 : index
    %c0_18 = arith.constant 0 : index
    %c5 = arith.constant 5 : index
    %15 = vector.load %arg2[%c0_17, %c0_18, %c5] : memref<1x4x24xf32, #tpu.memory_space<vmem>>, vector<1x4x16xf32>
    %16 = vector.shape_cast %15 : vector<1x4x16xf32> to vector<4x16xf32>
    %c20 = arith.constant 20 : index
    %c0_19 = arith.constant 0 : index
    %17 = vector.load %arg5[%c20, %c0_19] : memref<40x16xf32, #tpu.memory_space<vmem>>, vector<4x16xf32>
    tpu.vector_store %arg5[%c20, %c0_19], %16 {strides = array<i32>} : memref<40x16xf32, #tpu.memory_space<vmem>>, vector<4x16xf32>,
    %c0_20 = arith.constant 0 : index
    %c0_21 = arith.constant 0 : index
    %c6 = arith.constant 6 : index
    %18 = vector.load %arg2[%c0_20, %c0_21, %c6] : memref<1x4x24xf32, #tpu.memory_space<vmem>>, vector<1x4x16xf32>
    %19 = vector.shape_cast %18 : vector<1x4x16xf32> to vector<4x16xf32>
    %c24 = arith.constant 24 : index
    %c0_22 = arith.constant 0 : index
    %20 = vector.load %arg5[%c24, %c0_22] : memref<40x16xf32, #tpu.memory_space<vmem>>, vector<4x16xf32>
    tpu.vector_store %arg5[%c24, %c0_22], %19 {strides = array<i32>} : memref<40x16xf32, #tpu.memory_space<vmem>>, vector<4x16xf32>,
    %c0_23 = arith.constant 0 : index
    %c0_24 = arith.constant 0 : index
    %c7 = arith.constant 7 : index
    %21 = vector.load %arg2[%c0_23, %c0_24, %c7] : memref<1x4x24xf32, #tpu.memory_space<vmem>>, vector<1x4x16xf32>
    %22 = vector.shape_cast %21 : vector<1x4x16xf32> to vector<4x16xf32>
    %c28 = arith.constant 28 : index
    %c0_25 = arith.constant 0 : index
    %23 = vector.load %arg5[%c28, %c0_25] : memref<40x16xf32, #tpu.memory_space<vmem>>, vector<4x16xf32>
    tpu.vector_store %arg5[%c28, %c0_25], %22 {strides = array<i32>} : memref<40x16xf32, #tpu.memory_space<vmem>>, vector<4x16xf32>,
    %c0_26 = arith.constant 0 : index
    %c0_27 = arith.constant 0 : index
    %c8_28 = arith.constant 8 : index
    %24 = vector.load %arg2[%c0_26, %c0_27, %c8_28] : memref<1x4x24xf32, #tpu.memory_space<vmem>>, vector<1x4x16xf32>
    %25 = vector.shape_cast %24 : vector<1x4x16xf32> to vector<4x16xf32>
    %c32 = arith.constant 32 : index
    %c0_29 = arith.constant 0 : index
    %26 = vector.load %arg5[%c32, %c0_29] : memref<40x16xf32, #tpu.memory_space<vmem>>, vector<4x16xf32>
    tpu.vector_store %arg5[%c32, %c0_29], %25 {strides = array<i32>} : memref<40x16xf32, #tpu.memory_space<vmem>>, vector<4x16xf32>,
    %cst = arith.constant 1.000000e+00 : f32
    %27 = vector.broadcast %cst : f32 to vector<1x16xf32>
    %c36 = arith.constant 36 : index
    %c0_30 = arith.constant 0 : index
    %28 = vector.load %arg5[%c36, %c0_30] : memref<40x16xf32, #tpu.memory_space<vmem>>, vector<1x16xf32>
    tpu.vector_store %arg5[%c36, %c0_30], %27 {strides = array<i32>} : memref<40x16xf32, #tpu.memory_space<vmem>>, vector<1x16xf32>,
    %cst_31 = arith.constant 0.000000e+00 : f32
    %29 = vector.broadcast %cst_31 : f32 to vector<3x16xf32>
    %c37 = arith.constant 37 : index
    %c0_32 = arith.constant 0 : index
    %30 = vector.load %arg5[%c37, %c0_32] : memref<40x16xf32, #tpu.memory_space<vmem>>, vector<3x16xf32>
    tpu.vector_store %arg5[%c37, %c0_32], %29 {strides = array<i32>} : memref<40x16xf32, #tpu.memory_space<vmem>>, vector<3x16xf32>,
    %c0_33 = arith.constant 0 : index
    %c0_34 = arith.constant 0 : index
    %31 = vector.load %arg3[%c0_33, %c0_34] : memref<4x40xf32, #tpu.memory_space<vmem>>, vector<4x40xf32>
    %c0_35 = arith.constant 0 : index
    %c0_36 = arith.constant 0 : index
    %32 = vector.load %arg5[%c0_35, %c0_36] : memref<40x16xf32, #tpu.memory_space<vmem>>, vector<40x16xf32>
    %cst_37 = arith.constant dense<0.000000e+00> : vector<4x16xf32>
    %33 = tpu.matmul %31, %32, %cst_37 {dimension_numbers = #tpu.dot_dimension_numbers<[1], [0], [0], [1], [0, 0, 1, 1], [], []>} : vector<4x40xf32>, vector<40x16xf32>, vector<4x16xf32> -> vector<4x16xf32>
    %c0_38 = arith.constant 0 : index
    %c0_39 = arith.constant 0 : index
    %c0_40 = arith.constant 0 : index
    %34 = vector.load %arg4[%c0_38, %c0_39, %c0_40] : memref<1x4x16xf32, #tpu.memory_space<vmem>>, vector<1x4x16xf32>
    %35 = vector.shape_cast %34 : vector<1x4x16xf32> to vector<4x16xf32>
    %36 = vector.shape_cast %33 : vector<4x16xf32> to vector<1x4x16xf32>
    tpu.vector_store %arg4[%c0_38, %c0_39, %c0_40], %36 {strides = array<i32>} : memref<1x4x16xf32, #tpu.memory_space<vmem>>, vector<1x4x16xf32>,
    return
  }
  func.func @transform_0(%arg0: i32, %arg1: i32) -> (i32, i32, i32) {
    %c0_i32 = arith.constant 0 : i32
    %c0_i32_0 = arith.constant 0 : i32
    %c0_i32_1 = arith.constant 0 : i32
    return %arg0, %c0_i32, %c0_i32_0 : i32, i32, i32
  }
  func.func @transform_1(%arg0: i32, %arg1: i32) -> (i32, i32) {
    %c0_i32 = arith.constant 0 : i32
    %c0_i32_0 = arith.constant 0 : i32
    %c0_i32_1 = arith.constant 0 : i32
    return %c0_i32, %c0_i32_0 : i32, i32
  }
  func.func @transform_2(%arg0: i32, %arg1: i32) -> (i32, i32, i32) {
    %c0_i32 = arith.constant 0 : i32
    %c0_i32_0 = arith.constant 0 : i32
    return %arg0, %c0_i32, %arg1 : i32, i32, i32
  }
}

</mosaic_0001>

<bundles_post_ra>
// kernel: tpu_custom_call.1
= control target key start
LH: loop header
LB: loop body
LE: loop exit
PB: predicated region body
PF: predicated region fallthrough
CT: control target
= control target key end

     0   :  { %7 = vsyncpa [#allocation4], 0  ;;  %s969_s0 = inlined_call_operand.hbm [shape: f32[2,4,24], index: 0, kind: input, shape index: {}]   ;;  %s970_s1 = inlined_call_operand.hbm [shape: f32[4,40], index: 1, kind: input, shape index: {}]   ;;  %s971_s2 = inlined_call_operand.hbm [shape: f32[2,4,16], index: 2, kind: output, shape index: {}]  }
   0x1   :  { %9 = vsyncpa [#allocation4 + $0x1], 0 }
   0x2   :  { %10 = vsyncpa [#allocation7], 0 }
   0x3   :  { %11 = vsyncpa [#allocation5], 0 }
   0x4   :  { %13 = vsyncpa [#allocation5 + $0x1], 0  ;;  %s728_s9 = smov 0   ;;  %s730_s10 = smov 0  }
   0x5   :  { %s732_s11 = smov 0   ;;  %s734_s12 = smov 0  }
   0x6   :  { %s736_s13 = smov 0   ;;  %s738_s14 = smov 0  }
   0x7 LB: > { %s426_s15 = sadd.s32 4294967295, %s696_s14   ;;  %s427_s16 = sadd.s32 4294967294, %s696_s14   ;;  %s696_s14 = sphi %s738_s14, %s19_s14   ;;  %s692_s13 = sphi %s736_s13, %s996_s13   ;;  %s688_s12 = sphi %s734_s12, %s995_s12   ;;  %s684_s11 = sphi %s732_s11, %s994_s11   ;;  %s680_s10 = sphi %s730_s10, %s993_s10   ;;  %s676_s9 = sphi %s728_s9, %s992_s9  }
   0x8   : > { %p51_p0 = scmp.ne.s32.totalorder %s680_s10, %s676_s9  ;;  %p762_p1 = scmp.eq.s32.totalorder %s426_s15, 0 }
   0x9   : > { %p766_p2 = scmp.eq.s32.totalorder %s426_s15, 1  ;;  %p104_p3 = scmp.eq.s32.totalorder %s427_s16, 1 }
   0xa   : > { %s976_s17 = scalar_select %p762_p1, 1, 0 }
   0xb   : > { %s977_s18 = scalar_select %p766_p2, 1, 0 }
   0xc   : > { %p772_p4 = por %p762_p1, %p51_p0  ;;  %p428_p5 = scmp.ge.s32.totalorder %s696_s14, 1 }
   0xd   : > { %p777_p6 = por %p104_p3, %p51_p0  ;;  %p111_p7 = scmp.lt.s32.totalorder %s696_s14, 3 }
   0xe   : > { %s978_s19 = scalar_select %p772_p4, 1, 0 }
   0xf   : > { %s979_s20 = scalar_select %p777_p6, 1, 0 }
  0x10   : > { %p782_p8 = pnand %p428_p5, %p111_p7  ;;  %s698_s22 = smov [#allocation6]  }
  0x11   : > { %s124_s23 = sshll.u32 %s698_s22, 4  ;;  %s31_s25 = sadd.s32 1, %s692_s13  ;;  %s125_s23 = int_to_ptr.vmem [resolvable:$true] %s124_s23 }
  0x12   : > { %s980_s21 = scalar_select %p782_p8, 1, 0 }
  0x13   : > { %p475_p10 = pneg %p782_p8  ;;  %s38_s26 = sadd.s32 1, %s684_s11 }
  0x14   : > { %p797_p12 = scmp.ge.s32.totalorder %s31_s25, 2  ;;  %s552_s30 = scalar_lea.hbm %s970_s1, 64 }
  0x15   : > { %p791_p11 = pnand %p475_p10, %p762_p1  ;;  %p553_p13 = scmp.ne.s32.totalorder %s970_s1, %s552_s30 }
  0x16   : > { %s982_s27 = scalar_select %p797_p12, 1, 0 }
  0x17   : > { %p554_p0 = pneg %p791_p11  ;;  %p559_p7 = scmp.lt.u32.totalorder %s552_s30, %s970_s1 }
  0x19   : > { %p555_p3 = pnand %p554_p0, %p553_p13 }
  0x1b   : > { %p556_p5 = pneg %p555_p3 }
  0x1d   : > { %p561_p10 = pnand %p559_p7, %p556_p5 }
  0x1f   : > { %564 = shalt.err (!%p561_p10)
}
  0x20   : > { %s565_s7 = scalar_lea.vmem %s125_s23, 64  ;;  %p573_p4 = scmp.lt.s32.totalorder %s125_s23, %s125_s23 }
  0x21   : > { %p566_p9 = scmp.ne.s32.totalorder %s125_s23, %s565_s7  ;;  %p574_p8 = scmp.lt.s32.totalorder %s565_s7, %s565_s7 }
  0x23   : > { %p568_p6 = pnand %p566_p9, %p554_p0  ;;  %p575_p2 = por %p574_p8, %p573_p4 }
  0x25   : > { %p569_p1 = pneg %p568_p6 }
  0x27   : > { %p576_p12 = pnand %p575_p2, %p569_p1 }
  0x29   : > { %579 = shalt.err (!%p576_p12)
}
  0x2a   : > { %478 = dma.hbm_to_vmem [thread:$0]  (!%p791_p11), %s970_s1, 64, %s125_s23, [#allocation7]  }
  0x2b   : > { %p983_p4 = scmp.ne.s32.totalorder %s982_s27, 0  ;;  %p45_p1 = scmp.ne.s32.totalorder %s684_s11, %s680_s10 }
  0x2c   : > { %p46_p2 = scmp.eq.s32.totalorder %s696_s14, 0  ;;  %p488_p6 = scmp.lt.s32.totalorder %s696_s14, 2 }
  0x2d   : > { %s998_s25 = smov (%p983_p4, %s31_s25), 0  ;;  %p984_p12 = scmp.ne.s32.totalorder %s977_s18, 0 }
  0x2e   : > { %s35_s16 = ssub.s32 %s692_s13, %s998_s25  ;;  %p47_p9 = por %p46_p2, %p45_p1 }
  0x2f   : > { %p36_p8 = scmp.eq.s32.totalorder %s35_s16, 0  ;;  %p829_p13 = por %p984_p12, %p45_p1 }
  0x30   : > { %s135_s24 = sand.u32 1, %s684_s11   ;;  %s432_s27 = sshll.u32 %s692_s13, 6 }
  0x31   : > { %s837_s28 = scalar_select %p36_p8, %s684_s11, %s38_s26  }
  0x32   : > { %s431_s23 = sshll.u32 %s135_s24, 2  ;;  %s843_s3 = scalar_lea.hbm %s969_s0, %s432_s27 }
  0x33   : > { %s139_s18 = scalar_lea.vmem [#allocation3], %s431_s23  ;;  %p847_p11 = pnand %p488_p6, %p47_p9 }
  0x34   : > { %s146_s4 = sshll.u32 %s139_s18, 4  ;;  %s136_s26 = scalar_lea.sflag [#allocation4], %s135_s24  ;;  %s845_s4 = int_to_ptr.vmem [resolvable:$true] %s146_s4 }
  0x35   : > { %s580_s6 = scalar_lea.hbm %s843_s3, 64  ;;  %p582_p3 = pneg %p847_p11 }
  0x36   : > { %p581_p0 = scmp.ne.s32.totalorder %s843_s3, %s580_s6  ;;  %s585_s15 = scalar_lea.hbm %s969_s0, 128 }
  0x37   : > { %p586_p10 = scmp.lt.u32.totalorder %s843_s3, %s969_s0  ;;  %p587_p4 = scmp.lt.u32.totalorder %s585_s15, %s580_s6 }
  0x38   : > { %p583_p5 = pnand %p582_p3, %p581_p0  ;;  %p589_p2 = scmp.lt.u32.totalorder %s580_s6, %s843_s3 }
  0x39   : > { %p588_p1 = por %p587_p4, %p586_p10 }
  0x3a   : > { %p584_p7 = pneg %p583_p5 }
  0x3b   : > { %p590_p6 = por %p589_p2, %p588_p1 }
  0x3d   : > { %p591_p8 = pnand %p590_p6, %p584_p7 }
  0x3f   : > { %594 = shalt.err (!%p591_p8)
}
  0x40   : > { %s595_s24 = scalar_lea.vmem %s845_s4, 64  ;;  %s699_s27 = smov [#allocation3]  }
  0x41   : > { %p596_p9 = scmp.ne.s32.totalorder %s845_s4, %s595_s24  ;;  %s600_s29 = sshll.u32 %s699_s27, 4  ;;  %s601_s29 = int_to_ptr.vmem [resolvable:$false] %s600_s29 }
  0x42   : > { %s602_s30 = scalar_lea.vmem %s601_s29, 128  ;;  %p603_p5 = scmp.lt.s32.totalorder %s845_s4, %s601_s29 }
  0x43   : > { %p598_p12 = pnand %p596_p9, %p582_p3  ;;  %p604_p10 = scmp.lt.s32.totalorder %s602_s30, %s595_s24 }
  0x45   : > { %p599_p0 = pneg %p598_p12  ;;  %p605_p4 = por %p604_p10, %p603_p5 }
  0x47   : > { %p606_p1 = pnand %p605_p4, %p599_p0 }
  0x49   : > { %609 = shalt.err (!%p606_p1)
}
  0x4a   : > { %482 = dma.hbm_to_vmem [thread:$0]  (!%p847_p11), %s843_s3, 64, %s845_s4, %s136_s26  }
  0x4b   : > { %p987_p7 = scmp.ne.s32.totalorder %s980_s21, 0 }
  0x4c   : > { %s879_s18 = sand.u32 (!%p987_p7), 1, %s680_s10   ;;  %p988_p3 = scmp.ne.s32.totalorder (!%p987_p7), %s978_s19, 0 }
  0x4d   : > { %155 = sbr.rel (%p987_p7) target bundleno = 457 (0x1c9), region = 28  ;;  %s434_s6 = sshll.u32 (!%p987_p7), %s879_s18, 2 }
  0x4e   : > { %s158_s7 = scalar_lea.sflag (!%p987_p7), [#allocation4], %s879_s18  ;;  %s885_s8 = scalar_lea.vmem (!%p987_p7), [#allocation3], %s434_s6 }
  0x54   : > { %663 = dma.done.wait (%p988_p3), %s158_s7, 64  }
  0x55   : > { %665 = vsyncadd (%p988_p3), %s158_s7, 4294967232  ;;  %p989_p11 = scmp.ne.s32.totalorder %s976_s17, 0 }
  0x57   : > { %667 = dma.done.wait (%p989_p11), [#allocation7], 64  }
  0x58   : > { %669 = vsyncadd (%p989_p11), [#allocation7], 4294967232  ;;  %v189_v0 = vld [vmem:[%s885_s8] sm:$0xf]  ;;  %s700_s21 = smov 127   ;;  %s701_s3 = smov 125  }
  0x59   : > { %v201_v1 = vld [vmem:[%s885_s8] sm:$0xf]  ;;  %191 = vrot.lane.b32.xlu0 %v189_v0, %s700_s21  ;;  %vm187_vm0 = vcmask 125952   ;;  %v702_v4 = vmov 0.0|0.0   ;;  %s703_s17 = smov 126   ;;  %s704_s19 = smov 124  }
  0x5a   : > { %203 = vrot.lane.b32.xlu1 %v201_v1, %s701_s3  ;;  %v195_v2 = vld [vmem:[%s885_s8] sm:$0xf]  ;;  %461 = vmatprep.subr.bf16.mxu0 %v702_v4  ;;  %vm239_vm1 = vcmask 124928   ;;  %vm237_vm2 = vcmask 122880   ;;  %v705_v8 = vmov 0.0   ;;  %v706_v9 = vmov 1.0  }
  0x5b   : > { %v207_v3 = vld [vmem:[%s885_s8] sm:$0xf]  ;;  %240 = vst.msk [vmem:[#allocation2 + $0x25] sm:$0x7] %vm239_vm1, %v705_v8  ;;  %s707_s4 = smov 123   ;;  %s708_s5 = smov 122  }
  0x5c   : > { %v186_v5 = vld [vmem:[%s885_s8] sm:$0xf]  ;;  %238 = vst.msk [vmem:[#allocation2 + $0x24] sm:$0x1] %vm237_vm2, %v706_v9  ;;  %s709_s26 = smov 121   ;;  %s710_s15 = smov 120  }
  0x5d   : > { %188 = vst.msk [vmem:[#allocation2] sm:$0xf] %vm187_vm0, %v186_v5  ;;  %197 = vrot.lane.b32.xlu0 %v195_v2, %s703_s17  ;;  %v213_v6 = vld [vmem:[%s885_s8] sm:$0xf]  ;;  %vm711_vm3 = vmmov 0   ;;  %vm247_vm4 = vcmask 326656  }
  0x5e   : > { %209 = vrot.lane.b32.xlu1 %v207_v3, %s704_s19  ;;  %v219_v7 = vld [vmem:[%s885_s8] sm:$0xf]  ;;  %458 = vmatprep.mubr.msk.f32.mxu0 %vm711_vm3, %v705_v8  ;;  %v241_v27 = vld [vmem:[#allocation6] sm:$0xf]  ;;  %s439_s16 = sshll.u32 %s688_s12, 6  ;;  %s185_s23 = scalar_lea.vmem [#allocation8], %s434_s6 }
  0x5f   : > { %v225_v10 = vld [vmem:[%s885_s8] sm:$0xf]  ;;  %s337_s24 = sshll.u32 %s185_s23, 4  ;;  %s919_s30 = scalar_lea.hbm %s971_s2, %s439_s16  ;;  %s921_s24 = int_to_ptr.vmem [resolvable:$true] %s337_s24 }
  0x60   : > { %v231_v11 = vld [vmem:[%s885_s8] sm:$0xf]  ;;  %s323_s7 = scalar_lea.sflag [#allocation5], %s879_s18  ;;  %s610_s8 = scalar_lea.vmem %s921_s24, 64 }
  0x61   : > { %215 = vrot.lane.b32.xlu0 %v213_v6, %s707_s4  ;;  %p611_p2 = scmp.ne.s32.totalorder %s921_s24, %s610_s8  ;;  %s712_s12 = smov [#allocation8]  }
  0x62   : > { %221 = vrot.lane.b32.xlu1 %v219_v7, %s708_s5  ;;  %s614_s6 = sshll.u32 %s712_s12, 4  ;;  %s615_s6 = int_to_ptr.vmem [resolvable:$false] %s614_s6 }
  0x63   : > { %p612_p6 = pnand %p611_p2, %p829_p13  ;;  %s616_s21 = scalar_lea.vmem %s615_s6, 128 }
  0x64   : > { %p617_p9 = scmp.lt.s32.totalorder %s921_s24, %s615_s6  ;;  %p618_p12 = scmp.lt.s32.totalorder %s616_s21, %s610_s8 }
  0x65   : > { %227 = vrot.lane.b32.xlu0 %v225_v10, %s709_s26  ;;  %p613_p8 = pneg %p612_p6 }
  0x66   : > { %233 = vrot.lane.b32.xlu1 %v231_v11, %s710_s15  ;;  %p619_p0 = por %p618_p12, %p617_p9 }
  0x68   : > { %p620_p5 = pnand %p619_p0, %p613_p8 }
  0xcb   : > { %v192_v12 = vpop.permute.xlu0 %191 }
  0xcc   : > { %v204_v13 = vpop.permute.xlu1 %203  ;;  %194 = vst.msk [vmem:[#allocation2 + $0x4] sm:$0xf] %vm187_vm0, %v192_v12 }
  0xcd   : > { %206 = vst.msk [vmem:[#allocation2 + $0xc] sm:$0xf] %vm187_vm0, %v204_v13 }
  0xcf   : > { %v198_v14 = vpop.permute.xlu0 %197 }
  0xd0   : > { %v210_v15 = vpop.permute.xlu1 %209  ;;  %200 = vst.msk [vmem:[#allocation2 + $0x8] sm:$0xf] %vm187_vm0, %v198_v14 }
  0xd1   : > { %212 = vst.msk [vmem:[#allocation2 + $0x10] sm:$0xf] %vm187_vm0, %v210_v15 }
  0xd3   : > { %v216_v16 = vpop.permute.xlu0 %215  ;;  %v242_v19 = vld [vmem:[#allocation2] sm:$0xff] }
  0xd4   : > { %v222_v17 = vpop.permute.xlu1 %221  ;;  %218 = vst.msk [vmem:[#allocation2 + $0x14] sm:$0xf] %vm187_vm0, %v216_v16 }
  0xd5   : > { %224 = vst.msk [vmem:[#allocation2 + $0x18] sm:$0xf] %vm187_vm0, %v222_v17 }
  0xd7   : > { %v228_v18 = vpop.permute.xlu0 %227  ;;  %v243_v20 = vld [vmem:[#allocation2 + $0x8] sm:$0xff] }
  0xd8   : > { %v234_v21 = vpop.permute.xlu1 %233  ;;  %230 = vst.msk [vmem:[#allocation2 + $0x1c] sm:$0xf] %vm187_vm0, %v228_v18  ;;  %v462_v22 = vpack.c.bf16 %v243_v20, %v242_v19 }
  0xd9   : > { %236 = vst.msk [vmem:[#allocation2 + $0x20] sm:$0xf] %vm187_vm0, %v234_v21 }
  0xda   : > { %463 = vmatpush3.bf16.msra.mxu0 %v462_v22 }
  0xdb   : > { %464 = vmatprep.subr.bf16.mxu0 %v702_v4  ;;  %v244_v23 = vld [vmem:[#allocation2 + $0x10] sm:$0xff] }
  0xdf   : > { %v245_v24 = vld [vmem:[#allocation2 + $0x18] sm:$0xff] }
  0xe0   : > { %v465_v25 = vpack.c.bf16 %v245_v24, %v244_v23  ;;  %v246_v26 = vld [vmem:[#allocation2 + $0x20] sm:$0xff] }
  0xe2   : > { %466 = vmatpush3.bf16.msra.mxu0 %v465_v25 }
  0xe3   : > { %456 = vmatprep.subr.mxu0 %v705_v8 }
  0xe6   : > { %457 = vmatpush3.msra.mxu0 %v246_v26 }
  0xe7   : > { %459 = vmatmul.mubr.msk.f32.vlgmr.msra.gmra.mrb[0].mxu0 %vm247_vm4, %v241_v27 }
 0x1ba   : > { %v317_v28 = vpop.f32.mrb[0].mxu0 }
 0x1bb   : > { %321 = vst.msk [vmem:[%s185_s23] sm:$0xf] %vm187_vm0, %v317_v28  ;;  %v460_v29 = vpop.f32.mrb[1].mxu0 }
 0x1bc   : > { %623 = shalt.err (!%p620_p5)
}
 0x1bd   : > { %s624_s18 = scalar_lea.hbm %s919_s30, 64  ;;  %s628_s19 = scalar_lea.hbm %s971_s2, 128 }
 0x1be   : > { %p625_p10 = scmp.ne.s32.totalorder %s919_s30, %s624_s18  ;;  %p629_p7 = scmp.lt.u32.totalorder %s919_s30, %s971_s2 }
 0x1bf   : > { %p630_p3 = scmp.lt.u32.totalorder %s628_s19, %s624_s18  ;;  %p632_p2 = scmp.lt.u32.totalorder %s624_s18, %s919_s30 }
 0x1c0   : > { %p626_p4 = pnand %p625_p10, %p829_p13 }
 0x1c1   : > { %p631_p11 = por %p630_p3, %p629_p7 }
 0x1c2   : > { %p627_p1 = pneg %p626_p4 }
 0x1c3   : > { %p633_p6 = por %p632_p2, %p631_p11 }
 0x1c5   : > { %p634_p8 = pnand %p633_p6, %p627_p1 }
 0x1c7   : > { %637 = shalt.err (!%p634_p8)
}
 0x1c8   : > { %473 = dma.vmem_to_hbm [thread:$0]  (%p829_p13), %s921_s24, 64, %s919_s30, %s323_s7  }
 0x1c9 PF: > { %s349_s26 = sand.u32 1, %s676_s9   ;;  %p990_p9 = scmp.ne.s32.totalorder %s979_s20, 0 }
 0x1ca   : > { %p991_p12 = scmp.ge.s32.totalorder %s696_s14, 2  ;;  %s350_s15 = scalar_lea.sflag [#allocation5], %s349_s26 }
 0x1cc   : > { %p484_p0 = pnand %p991_p12, %p990_p9 }
 0x1ce   : > { %671 = dma.done.wait (!%p484_p0), %s350_s15, 64  }
 0x1cf   : > { %673 = vsyncadd (!%p484_p0), %s350_s15, 4294967232  ;;  %s19_s14 = sadd.s32 1, %s696_s14   ;;  %s992_s9 = smov %s680_s10 }
 0x1d0   : > { %p16_p5 = scmp.ge.s32.totalorder %s19_s14, 4   ;;  %s993_s10 = smov %s684_s11 }
 0x1d1   : > { %s994_s11 = smov %s837_s28  ;;  %s995_s12 = smov %s692_s13 }
 0x1d2   : > { %s996_s13 = smov %s998_s25  ;;  %18 = sbr.rel (!%p16_p5) target bundleno = 7 (0x7), region = 77 }
 0x1d9   :  { %355 = vsyncpa [#allocation4], 1 }
 0x1da   :  { %357 = vsyncpa [#allocation4 + $0x1], 1 }
 0x1db   :  { %358 = vsyncpa [#allocation7], 1 }
 0x1dc   :  { %359 = vsyncpa [#allocation5], 1 }
 0x1dd   :  { %361 = vsyncpa [#allocation5 + $0x1], 1 }

</bundles_post_ra>
